<compile_context>
chip_gen: v7x
topology: tpu7x:2x2x1
jax: 0.10.0
libtpu: 0.0.40
codegen_flags: <defaults>
</compile_context>

<pallas_src>
import functools

import numpy as np

import jax
import jax.numpy as jnp
from jax.experimental import pallas as pl
from jax.experimental.pallas import tpu as pltpu


KERNEL_SIZES = (5, 9, 13)


def _pool_axis(v, radius, stride, bias_rows):
    """Stride-1 centered max pool (window 2*radius+1) along one logical
    spatial axis of a lane-dense (C, L) tile.  The axis is laid out along the
    lane dimension with the given lane `stride`.  Each non-center tap is a
    lane rotation (XLU) plus a precomputed additive 0/-inf boundary bias; taps
    are combined with a balanced tree of maxima (short VALU dep chain)."""
    L = v.shape[-1]
    parts = [v]                                    # center tap (always valid)
    for off in range(-radius, radius + 1):
        if off == 0:
            continue
        # rolled[:, l] == v[:, (l + off*stride) % L]; wrapped lanes are masked
        # to -inf by the bias row.
        shift = (-off * stride) % L
        rolled = pltpu.roll(v, shift, axis=v.ndim - 1)
        parts.append(rolled + bias_rows[off])
    while len(parts) > 1:
        nxt = [jnp.maximum(a, b) for a, b in zip(parts[0::2], parts[1::2])]
        if len(parts) % 2:
            nxt.append(parts[-1])
        parts = nxt
    return parts[0]


def _spp_kernel(x_ref, w1t_ref, b1_ref, w2t_ref, b2_ref, bias_ref, o_ref, *,
                W, chain_radii, rmax):
    """Fused conv1(1x1)+SiLU -> chained max pools (SPPF) -> conv2(1x1)+SiLU,
    with the conv2 accumulation interleaved into the pool chain."""
    # conv1: 1x1 conv == channel matmul; lane-dense output (Ch, L).
    h = jnp.dot(w1t_ref[...], x_ref[...], preferred_element_type=jnp.float32)
    h = h + b1_ref[...]                            # (Ch, L) + (Ch, 1)
    h = h * jax.nn.sigmoid(h)                      # SiLU

    # Precomputed 0/-inf boundary biases, hoisted out of the chain loop.
    # Row layout: W-axis offsets [-rmax..-1, 1..rmax], then same for H-axis.
    bias = bias_ref[...]                           # (4*rmax, L)
    half = 2 * rmax
    w_bias, h_bias = {}, {}
    row = 0
    for off in range(-rmax, rmax + 1):
        if off == 0:
            continue
        w_bias[off] = bias[row:row + 1, :]
        h_bias[off] = bias[half + row:half + row + 1, :]
        row += 1

    w2t = w2t_ref[...]                             # (n_branches, Cout, Ch)

    # Interleaved conv2: running accumulator, one live (Ch, L) pooled tile.
    y = jnp.dot(w2t[0], h, preferred_element_type=jnp.float32)
    p = h
    for i, r in enumerate(chain_radii):
        p = _pool_axis(p, r, 1, w_bias)            # along W (lane stride 1)
        p = _pool_axis(p, r, W, h_bias)            # along H (lane stride W)
        y = y + jnp.dot(w2t[i + 1], p, preferred_element_type=jnp.float32)

    y = y + b2_ref[...]                            # (Cout, L) + (Cout, 1)
    y = y * jax.nn.sigmoid(y)                      # SiLU
    o_ref[...] = y.astype(o_ref.dtype)


def spp_bottleneck(x_nchw, w1, b1, w2, b2, ks_list=KERNEL_SIZES,
                   batch_block=None):
    """x_nchw: (N, Cin, H, W); w1: (Cin, Ch); b1: (Ch,);
    w2: ((len(ks)+1)*Ch, Cout); b2: (Cout,)."""
    N, Cin, H, W = x_nchw.shape
    Ch = w1.shape[1]
    Cout = w2.shape[1]
    n_branches = len(ks_list) + 1
    assert w2.shape[0] == n_branches * Ch
    L = H * W

    # Toy-shape default: fold the whole batch onto the lane axis (one grid
    # step, fuller lanes).  For production (large H*W / v7x with 2 TCs) pick
    # a smaller batch_block or add a spatial grid axis so >=2 parallel
    # programs exist.
    if batch_block is None:
        batch_block = N
    assert N % batch_block == 0
    G = N // batch_block
    NBL = batch_block * L

    # SPPF chain: radii of chained windows whose receptive fields telescope to
    # each requested kernel size.  For (5, 9, 13) this is (2, 2, 2) (5x5 x3).
    chain_radii = []
    prev = 1
    for ks in ks_list:
        assert ks > prev and (ks - prev) % 2 == 0, "kernel_sizes must be increasing odd"
        chain_radii.append((ks - prev) // 2)
        prev = ks
    rmax = max(chain_radii)

    # Fold batch_block images onto the lane axis: (G, Cin, batch_block*H*W).
    x_folded = (x_nchw.reshape(G, batch_block, Cin, L)
                .transpose(0, 2, 1, 3)
                .reshape(G, Cin, NBL))

    w1t = jnp.transpose(w1, (1, 0))                               # (Ch, Cin)
    b1r = b1.reshape(Ch, 1)
    w2t = jnp.transpose(w2.reshape(n_branches, Ch, Cout), (0, 2, 1))  # (nb, Cout, Ch)
    b2r = b2.reshape(Cout, 1)

    # Host-precomputed additive boundary biases (0 valid / -inf out of bounds)
    # per tap offset, for both axes.  Batch boundaries inside the folded lane
    # axis are covered because h_idx wraps every H rows; roll wrap-around at
    # the array ends is covered by the same rows.
    pos = np.arange(NBL, dtype=np.int64)
    w_idx = pos % W
    h_idx = (pos // W) % H
    rows = []
    for idx, extent in ((w_idx, W), (h_idx, H)):
        for off in range(-rmax, rmax + 1):
            if off == 0:
                continue
            valid = (idx + off >= 0) & (idx + off < extent)
            rows.append(np.where(valid, 0.0, -np.inf))
    bias = jnp.asarray(np.stack(rows), dtype=jnp.float32)         # (4*rmax, NBL)

    kernel = functools.partial(_spp_kernel, W=W,
                               chain_radii=tuple(chain_radii), rmax=rmax)

    matmul_flops = 2 * N * L * Ch * (Cin + n_branches * Cout)
    pool_flops = N * L * Ch * sum(8 * r for r in chain_radii)
    cost = pl.CostEstimate(
        flops=matmul_flops + pool_flops,
        transcendentals=N * L * (Ch + Cout),       # sigmoids of the two SiLUs
        bytes_accessed=4 * (x_nchw.size + N * Cout * L + w1.size + b1.size
                            + w2.size + b2.size + bias.size),
    )

    out_folded = pl.pallas_call(
        kernel,
        out_shape=jax.ShapeDtypeStruct((G, Cout, NBL), x_nchw.dtype),
        grid_spec=pltpu.PrefetchScalarGridSpec(
            num_scalar_prefetch=0,
            grid=(G,),
            in_specs=[
                pl.BlockSpec((None, Cin, NBL), lambda g: (g, 0, 0)),
                pl.BlockSpec((Ch, Cin), lambda g: (0, 0)),
                pl.BlockSpec((Ch, 1), lambda g: (0, 0)),
                pl.BlockSpec((n_branches, Cout, Ch), lambda g: (0, 0, 0)),
                pl.BlockSpec((Cout, 1), lambda g: (0, 0)),
                pl.BlockSpec((4 * rmax, NBL), lambda g: (0, 0)),
            ],
            out_specs=pl.BlockSpec((None, Cout, NBL), lambda g: (g, 0, 0)),
        ),
        compiler_params=pltpu.CompilerParams(
            dimension_semantics=("parallel",),
            # Blocks are tiny here; keep an explicit cap (v5e's default scoped
            # limit is only 16 MiB).  Raise toward 64-96 MiB on v5e/v6e
            # (<= ~48 MiB on v7x) if/when spatial tiling with large blocks is
            # added for production H, W.
            vmem_limit_bytes=32 * 1024 * 1024,
        ),
        cost_estimate=cost,
    )(x_folded, w1t, b1r, w2t, b2r, bias)

    # Unfold back to NCHW.
    out = (out_folded.reshape(G, Cout, batch_block, L)
           .transpose(0, 2, 1, 3)
           .reshape(N, Cout, H, W))
    return out


def spp_bottleneck_ref(x_nchw, w1, b1, w2, b2, ks_list=KERNEL_SIZES):
    """Pure-JAX reference mirroring the PyTorch forward (NCHW)."""
    x = jnp.einsum('nchw,cd->ndhw', x_nchw, w1) + b1[None, :, None, None]
    x = x * jax.nn.sigmoid(x)
    pools = [x]
    for ks in ks_list:
        p = ks // 2
        pooled = jax.lax.reduce_window(
            x, -jnp.inf, jax.lax.max,
            window_dimensions=(1, 1, ks, ks),
            window_strides=(1, 1, 1, 1),
            padding=[(0, 0), (0, 0), (p, p), (p, p)])
        pools.append(pooled)
    cat = jnp.concatenate(pools, axis=1)
    y = jnp.einsum('nchw,cd->ndhw', cat, w2) + b2[None, :, None, None]
    return y * jax.nn.sigmoid(y)


if __name__ == "__main__":
    # Module config: SPPBottleneck(in_channels=4, out_channels=4)
    N, Cin, H, W = 2, 4, 16, 16
    Ch = Cin // 2                                   # hidden_channels
    Cout = 4
    C2in = Ch * (len(KERNEL_SIZES) + 1)             # conv2 input channels

    key = jax.random.PRNGKey(0)
    kx, kw1, kb1, kw2, kb2 = jax.random.split(key, 5)

    x = jax.random.normal(kx, (N, Cin, H, W), dtype=jnp.float32)
    # Deterministic synthetic parameters (Conv2d 1x1 weights folded to matrices).
    w1 = 0.3 * jax.random.normal(kw1, (Cin, Ch), dtype=jnp.float32)
    b1 = 0.1 * jax.random.normal(kb1, (Ch,), dtype=jnp.float32)
    w2 = 0.3 * jax.random.normal(kw2, (C2in, Cout), dtype=jnp.float32)
    b2 = 0.1 * jax.random.normal(kb2, (Cout,), dtype=jnp.float32)

    out = spp_bottleneck(x, w1, b1, w2, b2)
    out = jax.block_until_ready(out)

    ref = spp_bottleneck_ref(x, w1, b1, w2, b2)
    assert out.shape == (N, Cout, H, W)
    assert jnp.allclose(out, ref, rtol=2e-3, atol=2e-3), "mismatch vs reference"

    print("KERNEL_OK")
</pallas_src>

<mosaic_0001>
module attributes {stable_mosaic.version = 11 : i64} {
  func.func @_spp_kernel(%arg0: i32, %arg1: memref<1x4x512xf32, #tpu.memory_space<vmem>>, %arg2: memref<2x4xf32, #tpu.memory_space<vmem>>, %arg3: memref<2x1xf32, #tpu.memory_space<vmem>>, %arg4: memref<4x4x2xf32, #tpu.memory_space<vmem>>, %arg5: memref<4x1xf32, #tpu.memory_space<vmem>>, %arg6: memref<8x512xf32, #tpu.memory_space<vmem>>, %arg7: memref<1x4x512xf32, #tpu.memory_space<vmem>>) attributes {dimension_semantics = [#tpu.dimension_semantics<parallel>], iteration_bounds = array<i64: 1>, scalar_prefetch = 0 : i64, scratch_operands = 0 : i64, tpu.core_type = #tpu.core_type<tc>, window_params = [{transform_indices = @transform_0, window_bounds = array<i64: 1, 4, 512>}, {pipeline_mode = #tpu.pipeline_mode<synchronous>, transform_indices = @transform_1, window_bounds = array<i64: 2, 4>}, {pipeline_mode = #tpu.pipeline_mode<synchronous>, transform_indices = @transform_2, window_bounds = array<i64: 2, 1>}, {pipeline_mode = #tpu.pipeline_mode<synchronous>, transform_indices = @transform_3, window_bounds = array<i64: 4, 4, 2>}, {pipeline_mode = #tpu.pipeline_mode<synchronous>, transform_indices = @transform_4, window_bounds = array<i64: 4, 1>}, {pipeline_mode = #tpu.pipeline_mode<synchronous>, transform_indices = @transform_5, window_bounds = array<i64: 8, 512>}, {transform_indices = @transform_6, window_bounds = array<i64: 1, 4, 512>}]} {
    %c0 = arith.constant 0 : index
    %c0_0 = arith.constant 0 : index
    %0 = vector.load %arg2[%c0, %c0_0] : memref<2x4xf32, #tpu.memory_space<vmem>>, vector<2x4xf32>
    %c0_1 = arith.constant 0 : index
    %c0_2 = arith.constant 0 : index
    %c0_3 = arith.constant 0 : index
    %1 = vector.load %arg1[%c0_1, %c0_2, %c0_3] : memref<1x4x512xf32, #tpu.memory_space<vmem>>, vector<1x4x512xf32>
    %2 = vector.shape_cast %1 : vector<1x4x512xf32> to vector<4x512xf32>
    %cst = arith.constant dense<0.000000e+00> : vector<2x512xf32>
    %3 = tpu.matmul %0, %2, %cst {dimension_numbers = #tpu.dot_dimension_numbers<[1], [0], [0], [1], [0, 0, 1, 1], [], []>} : vector<2x4xf32>, vector<4x512xf32>, vector<2x512xf32> -> vector<2x512xf32>
    %c0_4 = arith.constant 0 : index
    %c0_5 = arith.constant 0 : index
    %4 = vector.load %arg3[%c0_4, %c0_5] : memref<2x1xf32, #tpu.memory_space<vmem>>, vector<2x1xf32>
    %5 = vector.broadcast %4 : vector<2x1xf32> to vector<2x512xf32>
    %6 = arith.addf %3, %5 : vector<2x512xf32>
    %7 = arith.negf %6 : vector<2x512xf32>
    %8 = math.exp %7 : vector<2x512xf32>
    %cst_6 = arith.constant 1.000000e+00 : f32
    %9 = vector.broadcast %cst_6 : f32 to vector<2x512xf32>
    %10 = arith.addf %9, %8 : vector<2x512xf32>
    %11 = arith.divf %9, %10 : vector<2x512xf32>
    %12 = arith.mulf %6, %11 : vector<2x512xf32>
    %c0_7 = arith.constant 0 : index
    %c0_8 = arith.constant 0 : index
    %13 = vector.load %arg6[%c0_7, %c0_8] : memref<8x512xf32, #tpu.memory_space<vmem>>, vector<8x512xf32>
    %14 = vector.extract_strided_slice %13 {offsets = [0, 0], sizes = [1, 512], strides = [1, 1]} : vector<8x512xf32> to vector<1x512xf32>
    %15 = vector.extract_strided_slice %13 {offsets = [4, 0], sizes = [1, 512], strides = [1, 1]} : vector<8x512xf32> to vector<1x512xf32>
    %16 = vector.extract_strided_slice %13 {offsets = [1, 0], sizes = [1, 512], strides = [1, 1]} : vector<8x512xf32> to vector<1x512xf32>
    %17 = vector.extract_strided_slice %13 {offsets = [5, 0], sizes = [1, 512], strides = [1, 1]} : vector<8x512xf32> to vector<1x512xf32>
    %18 = vector.extract_strided_slice %13 {offsets = [2, 0], sizes = [1, 512], strides = [1, 1]} : vector<8x512xf32> to vector<1x512xf32>
    %19 = vector.extract_strided_slice %13 {offsets = [6, 0], sizes = [1, 512], strides = [1, 1]} : vector<8x512xf32> to vector<1x512xf32>
    %20 = vector.extract_strided_slice %13 {offsets = [3, 0], sizes = [1, 512], strides = [1, 1]} : vector<8x512xf32> to vector<1x512xf32>
    %21 = vector.extract_strided_slice %13 {offsets = [7, 0], sizes = [1, 512], strides = [1, 1]} : vector<8x512xf32> to vector<1x512xf32>
    %c0_9 = arith.constant 0 : index
    %c0_10 = arith.constant 0 : index
    %c0_11 = arith.constant 0 : index
    %22 = vector.load %arg4[%c0_9, %c0_10, %c0_11] : memref<4x4x2xf32, #tpu.memory_space<vmem>>, vector<4x4x2xf32>
    %23 = vector.extract_strided_slice %22 {offsets = [0, 0, 0], sizes = [1, 4, 2], strides = [1, 1, 1]} : vector<4x4x2xf32> to vector<1x4x2xf32>
    %24 = vector.shape_cast %23 : vector<1x4x2xf32> to vector<4x2xf32>
    %cst_12 = arith.constant dense<0.000000e+00> : vector<4x512xf32>
    %25 = tpu.matmul %24, %12, %cst_12 {dimension_numbers = #tpu.dot_dimension_numbers<[1], [0], [0], [1], [0, 0, 1, 1], [], []>} : vector<4x2xf32>, vector<2x512xf32>, vector<4x512xf32> -> vector<4x512xf32>
    %c2_i32 = arith.constant 2 : i32
    %26 = tpu.dynamic_rotate %12 by %c2_i32 dim 1 : vector<2x512xf32>, i32 -> vector<2x512xf32>
    %27 = vector.broadcast %14 : vector<1x512xf32> to vector<2x512xf32>
    %28 = arith.addf %26, %27 : vector<2x512xf32>
    %c1_i32 = arith.constant 1 : i32
    %29 = tpu.dynamic_rotate %12 by %c1_i32 dim 1 : vector<2x512xf32>, i32 -> vector<2x512xf32>
    %30 = vector.broadcast %16 : vector<1x512xf32> to vector<2x512xf32>
    %31 = arith.addf %29, %30 : vector<2x512xf32>
    %c511_i32 = arith.constant 511 : i32
    %32 = tpu.dynamic_rotate %12 by %c511_i32 dim 1 : vector<2x512xf32>, i32 -> vector<2x512xf32>
    %33 = vector.broadcast %18 : vector<1x512xf32> to vector<2x512xf32>
    %34 = arith.addf %32, %33 : vector<2x512xf32>
    %c510_i32 = arith.constant 510 : i32
    %35 = tpu.dynamic_rotate %12 by %c510_i32 dim 1 : vector<2x512xf32>, i32 -> vector<2x512xf32>
    %36 = vector.broadcast %20 : vector<1x512xf32> to vector<2x512xf32>
    %37 = arith.addf %35, %36 : vector<2x512xf32>
    %38 = arith.maximumf %12, %28 : vector<2x512xf32>
    %39 = arith.maximumf %31, %34 : vector<2x512xf32>
    %40 = arith.maximumf %38, %39 : vector<2x512xf32>
    %41 = arith.maximumf %40, %37 : vector<2x512xf32>
    %c32_i32 = arith.constant 32 : i32
    %42 = tpu.dynamic_rotate %41 by %c32_i32 dim 1 : vector<2x512xf32>, i32 -> vector<2x512xf32>
    %43 = vector.broadcast %15 : vector<1x512xf32> to vector<2x512xf32>
    %44 = arith.addf %42, %43 : vector<2x512xf32>
    %c16_i32 = arith.constant 16 : i32
    %45 = tpu.dynamic_rotate %41 by %c16_i32 dim 1 : vector<2x512xf32>, i32 -> vector<2x512xf32>
    %46 = vector.broadcast %17 : vector<1x512xf32> to vector<2x512xf32>
    %47 = arith.addf %45, %46 : vector<2x512xf32>
    %c496_i32 = arith.constant 496 : i32
    %48 = tpu.dynamic_rotate %41 by %c496_i32 dim 1 : vector<2x512xf32>, i32 -> vector<2x512xf32>
    %49 = vector.broadcast %19 : vector<1x512xf32> to vector<2x512xf32>
    %50 = arith.addf %48, %49 : vector<2x512xf32>
    %c480_i32 = arith.constant 480 : i32
    %51 = tpu.dynamic_rotate %41 by %c480_i32 dim 1 : vector<2x512xf32>, i32 -> vector<2x512xf32>
    %52 = vector.broadcast %21 : vector<1x512xf32> to vector<2x512xf32>
    %53 = arith.addf %51, %52 : vector<2x512xf32>
    %54 = arith.maximumf %41, %44 : vector<2x512xf32>
    %55 = arith.maximumf %47, %50 : vector<2x512xf32>
    %56 = arith.maximumf %54, %55 : vector<2x512xf32>
    %57 = arith.maximumf %56, %53 : vector<2x512xf32>
    %58 = vector.extract_strided_slice %22 {offsets = [1, 0, 0], sizes = [1, 4, 2], strides = [1, 1, 1]} : vector<4x4x2xf32> to vector<1x4x2xf32>
    %59 = vector.shape_cast %58 : vector<1x4x2xf32> to vector<4x2xf32>
    %cst_13 = arith.constant dense<0.000000e+00> : vector<4x512xf32>
    %60 = tpu.matmul %59, %57, %cst_13 {dimension_numbers = #tpu.dot_dimension_numbers<[1], [0], [0], [1], [0, 0, 1, 1], [], []>} : vector<4x2xf32>, vector<2x512xf32>, vector<4x512xf32> -> vector<4x512xf32>
    %61 = arith.addf %25, %60 : vector<4x512xf32>
    %c2_i32_14 = arith.constant 2 : i32
    %62 = tpu.dynamic_rotate %57 by %c2_i32_14 dim 1 : vector<2x512xf32>, i32 -> vector<2x512xf32>
    %63 = vector.broadcast %14 : vector<1x512xf32> to vector<2x512xf32>
    %64 = arith.addf %62, %63 : vector<2x512xf32>
    %c1_i32_15 = arith.constant 1 : i32
    %65 = tpu.dynamic_rotate %57 by %c1_i32_15 dim 1 : vector<2x512xf32>, i32 -> vector<2x512xf32>
    %66 = vector.broadcast %16 : vector<1x512xf32> to vector<2x512xf32>
    %67 = arith.addf %65, %66 : vector<2x512xf32>
    %c511_i32_16 = arith.constant 511 : i32
    %68 = tpu.dynamic_rotate %57 by %c511_i32_16 dim 1 : vector<2x512xf32>, i32 -> vector<2x512xf32>
    %69 = vector.broadcast %18 : vector<1x512xf32> to vector<2x512xf32>
    %70 = arith.addf %68, %69 : vector<2x512xf32>
    %c510_i32_17 = arith.constant 510 : i32
    %71 = tpu.dynamic_rotate %57 by %c510_i32_17 dim 1 : vector<2x512xf32>, i32 -> vector<2x512xf32>
    %72 = vector.broadcast %20 : vector<1x512xf32> to vector<2x512xf32>
    %73 = arith.addf %71, %72 : vector<2x512xf32>
    %74 = arith.maximumf %57, %64 : vector<2x512xf32>
    %75 = arith.maximumf %67, %70 : vector<2x512xf32>
    %76 = arith.maximumf %74, %75 : vector<2x512xf32>
    %77 = arith.maximumf %76, %73 : vector<2x512xf32>
    %c32_i32_18 = arith.constant 32 : i32
    %78 = tpu.dynamic_rotate %77 by %c32_i32_18 dim 1 : vector<2x512xf32>, i32 -> vector<2x512xf32>
    %79 = vector.broadcast %15 : vector<1x512xf32> to vector<2x512xf32>
    %80 = arith.addf %78, %79 : vector<2x512xf32>
    %c16_i32_19 = arith.constant 16 : i32
    %81 = tpu.dynamic_rotate %77 by %c16_i32_19 dim 1 : vector<2x512xf32>, i32 -> vector<2x512xf32>
    %82 = vector.broadcast %17 : vector<1x512xf32> to vector<2x512xf32>
    %83 = arith.addf %81, %82 : vector<2x512xf32>
    %c496_i32_20 = arith.constant 496 : i32
    %84 = tpu.dynamic_rotate %77 by %c496_i32_20 dim 1 : vector<2x512xf32>, i32 -> vector<2x512xf32>
    %85 = vector.broadcast %19 : vector<1x512xf32> to vector<2x512xf32>
    %86 = arith.addf %84, %85 : vector<2x512xf32>
    %c480_i32_21 = arith.constant 480 : i32
    %87 = tpu.dynamic_rotate %77 by %c480_i32_21 dim 1 : vector<2x512xf32>, i32 -> vector<2x512xf32>
    %88 = vector.broadcast %21 : vector<1x512xf32> to vector<2x512xf32>
    %89 = arith.addf %87, %88 : vector<2x512xf32>
    %90 = arith.maximumf %77, %80 : vector<2x512xf32>
    %91 = arith.maximumf %83, %86 : vector<2x512xf32>
    %92 = arith.maximumf %90, %91 : vector<2x512xf32>
    %93 = arith.maximumf %92, %89 : vector<2x512xf32>
    %94 = vector.extract_strided_slice %22 {offsets = [2, 0, 0], sizes = [1, 4, 2], strides = [1, 1, 1]} : vector<4x4x2xf32> to vector<1x4x2xf32>
    %95 = vector.shape_cast %94 : vector<1x4x2xf32> to vector<4x2xf32>
    %cst_22 = arith.constant dense<0.000000e+00> : vector<4x512xf32>
    %96 = tpu.matmul %95, %93, %cst_22 {dimension_numbers = #tpu.dot_dimension_numbers<[1], [0], [0], [1], [0, 0, 1, 1], [], []>} : vector<4x2xf32>, vector<2x512xf32>, vector<4x512xf32> -> vector<4x512xf32>
    %97 = arith.addf %61, %96 : vector<4x512xf32>
    %c2_i32_23 = arith.constant 2 : i32
    %98 = tpu.dynamic_rotate %93 by %c2_i32_23 dim 1 : vector<2x512xf32>, i32 -> vector<2x512xf32>
    %99 = vector.broadcast %14 : vector<1x512xf32> to vector<2x512xf32>
    %100 = arith.addf %98, %99 : vector<2x512xf32>
    %c1_i32_24 = arith.constant 1 : i32
    %101 = tpu.dynamic_rotate %93 by %c1_i32_24 dim 1 : vector<2x512xf32>, i32 -> vector<2x512xf32>
    %102 = vector.broadcast %16 : vector<1x512xf32> to vector<2x512xf32>
    %103 = arith.addf %101, %102 : vector<2x512xf32>
    %c511_i32_25 = arith.constant 511 : i32
    %104 = tpu.dynamic_rotate %93 by %c511_i32_25 dim 1 : vector<2x512xf32>, i32 -> vector<2x512xf32>
    %105 = vector.broadcast %18 : vector<1x512xf32> to vector<2x512xf32>
    %106 = arith.addf %104, %105 : vector<2x512xf32>
    %c510_i32_26 = arith.constant 510 : i32
    %107 = tpu.dynamic_rotate %93 by %c510_i32_26 dim 1 : vector<2x512xf32>, i32 -> vector<2x512xf32>
    %108 = vector.broadcast %20 : vector<1x512xf32> to vector<2x512xf32>
    %109 = arith.addf %107, %108 : vector<2x512xf32>
    %110 = arith.maximumf %93, %100 : vector<2x512xf32>
    %111 = arith.maximumf %103, %106 : vector<2x512xf32>
    %112 = arith.maximumf %110, %111 : vector<2x512xf32>
    %113 = arith.maximumf %112, %109 : vector<2x512xf32>
    %c32_i32_27 = arith.constant 32 : i32
    %114 = tpu.dynamic_rotate %113 by %c32_i32_27 dim 1 : vector<2x512xf32>, i32 -> vector<2x512xf32>
    %115 = vector.broadcast %15 : vector<1x512xf32> to vector<2x512xf32>
    %116 = arith.addf %114, %115 : vector<2x512xf32>
    %c16_i32_28 = arith.constant 16 : i32
    %117 = tpu.dynamic_rotate %113 by %c16_i32_28 dim 1 : vector<2x512xf32>, i32 -> vector<2x512xf32>
    %118 = vector.broadcast %17 : vector<1x512xf32> to vector<2x512xf32>
    %119 = arith.addf %117, %118 : vector<2x512xf32>
    %c496_i32_29 = arith.constant 496 : i32
    %120 = tpu.dynamic_rotate %113 by %c496_i32_29 dim 1 : vector<2x512xf32>, i32 -> vector<2x512xf32>
    %121 = vector.broadcast %19 : vector<1x512xf32> to vector<2x512xf32>
    %122 = arith.addf %120, %121 : vector<2x512xf32>
    %c480_i32_30 = arith.constant 480 : i32
    %123 = tpu.dynamic_rotate %113 by %c480_i32_30 dim 1 : vector<2x512xf32>, i32 -> vector<2x512xf32>
    %124 = vector.broadcast %21 : vector<1x512xf32> to vector<2x512xf32>
    %125 = arith.addf %123, %124 : vector<2x512xf32>
    %126 = arith.maximumf %113, %116 : vector<2x512xf32>
    %127 = arith.maximumf %119, %122 : vector<2x512xf32>
    %128 = arith.maximumf %126, %127 : vector<2x512xf32>
    %129 = arith.maximumf %128, %125 : vector<2x512xf32>
    %130 = vector.extract_strided_slice %22 {offsets = [3, 0, 0], sizes = [1, 4, 2], strides = [1, 1, 1]} : vector<4x4x2xf32> to vector<1x4x2xf32>
    %131 = vector.shape_cast %130 : vector<1x4x2xf32> to vector<4x2xf32>
    %cst_31 = arith.constant dense<0.000000e+00> : vector<4x512xf32>
    %132 = tpu.matmul %131, %129, %cst_31 {dimension_numbers = #tpu.dot_dimension_numbers<[1], [0], [0], [1], [0, 0, 1, 1], [], []>} : vector<4x2xf32>, vector<2x512xf32>, vector<4x512xf32> -> vector<4x512xf32>
    %133 = arith.addf %97, %132 : vector<4x512xf32>
    %c0_32 = arith.constant 0 : index
    %c0_33 = arith.constant 0 : index
    %134 = vector.load %arg5[%c0_32, %c0_33] : memref<4x1xf32, #tpu.memory_space<vmem>>, vector<4x1xf32>
    %135 = vector.broadcast %134 : vector<4x1xf32> to vector<4x512xf32>
    %136 = arith.addf %133, %135 : vector<4x512xf32>
    %137 = arith.negf %136 : vector<4x512xf32>
    %138 = math.exp %137 : vector<4x512xf32>
    %cst_34 = arith.constant 1.000000e+00 : f32
    %139 = vector.broadcast %cst_34 : f32 to vector<4x512xf32>
    %140 = arith.addf %139, %138 : vector<4x512xf32>
    %141 = arith.divf %139, %140 : vector<4x512xf32>
    %142 = arith.mulf %136, %141 : vector<4x512xf32>
    %c0_35 = arith.constant 0 : index
    %c0_36 = arith.constant 0 : index
    %c0_37 = arith.constant 0 : index
    %143 = vector.load %arg7[%c0_35, %c0_36, %c0_37] : memref<1x4x512xf32, #tpu.memory_space<vmem>>, vector<1x4x512xf32>
    %144 = vector.shape_cast %143 : vector<1x4x512xf32> to vector<4x512xf32>
    %145 = vector.shape_cast %142 : vector<4x512xf32> to vector<1x4x512xf32>
    tpu.vector_store %arg7[%c0_35, %c0_36, %c0_37], %145 {strides = array<i32>} : memref<1x4x512xf32, #tpu.memory_space<vmem>>, vector<1x4x512xf32>,
    return
  }
  func.func @transform_0(%arg0: i32) -> (i32, i32, i32) {
    %c0_i32 = arith.constant 0 : i32
    %c0_i32_0 = arith.constant 0 : i32
    %c0_i32_1 = arith.constant 0 : i32
    return %arg0, %c0_i32, %c0_i32_0 : i32, i32, i32
  }
  func.func @transform_1(%arg0: i32) -> (i32, i32) {
    %c0_i32 = arith.constant 0 : i32
    %c0_i32_0 = arith.constant 0 : i32
    %c0_i32_1 = arith.constant 0 : i32
    return %c0_i32, %c0_i32_0 : i32, i32
  }
  func.func @transform_2(%arg0: i32) -> (i32, i32) {
    %c0_i32 = arith.constant 0 : i32
    %c0_i32_0 = arith.constant 0 : i32
    %c0_i32_1 = arith.constant 0 : i32
    return %c0_i32, %c0_i32_0 : i32, i32
  }
  func.func @transform_3(%arg0: i32) -> (i32, i32, i32) {
    %c0_i32 = arith.constant 0 : i32
    %c0_i32_0 = arith.constant 0 : i32
    %c0_i32_1 = arith.constant 0 : i32
    %c0_i32_2 = arith.constant 0 : i32
    return %c0_i32, %c0_i32_0, %c0_i32_1 : i32, i32, i32
  }
  func.func @transform_4(%arg0: i32) -> (i32, i32) {
    %c0_i32 = arith.constant 0 : i32
    %c0_i32_0 = arith.constant 0 : i32
    %c0_i32_1 = arith.constant 0 : i32
    return %c0_i32, %c0_i32_0 : i32, i32
  }
  func.func @transform_5(%arg0: i32) -> (i32, i32) {
    %c0_i32 = arith.constant 0 : i32
    %c0_i32_0 = arith.constant 0 : i32
    %c0_i32_1 = arith.constant 0 : i32
    return %c0_i32, %c0_i32_0 : i32, i32
  }
  func.func @transform_6(%arg0: i32) -> (i32, i32, i32) {
    %c0_i32 = arith.constant 0 : i32
    %c0_i32_0 = arith.constant 0 : i32
    %c0_i32_1 = arith.constant 0 : i32
    return %arg0, %c0_i32, %c0_i32_0 : i32, i32, i32
  }
}

</mosaic_0001>

<bundles_post_ra>
// kernel: tpu_custom_call.1
= control target key start
LH: loop header
LB: loop body
LE: loop exit
PB: predicated region body
PF: predicated region fallthrough
CT: control target
= control target key end

     0   :  { %vm41_vm0 = vcmask 1043456   ;;  %v2505_v4 = vmov 0.0   ;;  %s2498_s0 = inlined_call_operand.vmem [shape: f32[1,4,512], index: 0, kind: input, shape index: {}]   ;;  %s2499_s1 = inlined_call_operand.vmem [shape: f32[2,4], index: 1, kind: input, shape index: {}]   ;;  %s2500_s2 = inlined_call_operand.vmem [shape: f32[2,1], index: 2, kind: input, shape index: {}]   ;;  %s2501_s3 = inlined_call_operand.vmem [shape: f32[4,4,2], index: 3, kind: input, shape index: {}]   ;;  %s2502_s4 = inlined_call_operand.vmem [shape: f32[4,1], index: 4, kind: input, shape index: {}]   ;;  %s2503_s5 = inlined_call_operand.vmem [shape: f32[8,512], index: 5, kind: input, shape index: {}]   ;;  %s2504_s6 = inlined_call_operand.hbm [shape: f32[1,4,512], index: 6, kind: output, shape index: {}]  }
   0x1   :  { %v25_v0 = vld [vmem:[%s2498_s0] sm:$0xff]  ;;  %v26_v1 = vld [vmem:[%s2498_s0 + $0x8] sm:$0xff]  ;;  %114 = vmatprep.mubr.f32.mxu0 %v2505_v4  ;;  %185 = vmatprep.mubr.f32.mxu1 %v2505_v4 }
   0x2   :  { %v35_v2 = vcombine.high %v25_v0, %v25_v0  ;;  %v36_v3 = vcombine.high %v26_v1, %v26_v1 }
   0x3   :  { %11 = vsyncpa [#allocation3], 0  ;;  %v24_v5 = vld [vmem:[%s2499_s1] sm:$0x3]  ;;  %vm37_vm1 = vcmask 31744   ;;  %v1668_v6 = vmov 0   ;;  %v236_v39 = vlaneseq }
   0x4   :  { %1607 = vset.pattern.permute.xlu0 %v1668_v6  ;;  %1608 = vset.pattern.permute.xlu1 %v1668_v6  ;;  %v27_v7 = vld [vmem:[%s2500_s2] sm:$0x3]  ;;  %s1669_s1 = smov 2   ;;  %s1670_s2 = smov 1   ;;  %v1797_v53 = vld [vmem:[%s2503_s5 + $0x18] sm:$0xff]  ;;  %v1805_v55 = vld [vmem:[%s2503_s5 + $0x8] sm:$0xff] }
   0x5   :  { %1546 = vmatprep.subr.msk.mxu0 %vm41_vm0, %v35_v2  ;;  %1549 = vmatprep.subr.msk.mxu1 %vm41_vm0, %v36_v3  ;;  %s1671_s28 = smov 127   ;;  %s1672_s29 = smov 126   ;;  %v1777_v42 = vshrl.u32 %v236_v39, 7  ;;  %v1779_v45 = vand.u32 127, %v236_v39  ;;  %v1786_v49 = vld [vmem:[%s2503_s5] sm:$0xff]  ;;  %v1810_v56 = vld [vmem:[%s2503_s5 + $0x10] sm:$0xff] }
   0x6   :  { %1547 = vmatpush1.msk.msra.mxu0 %vm41_vm0, %v25_v0  ;;  %1550 = vmatpush1.msk.msra.mxu1 %vm41_vm0, %v26_v1  ;;  %s1673_s5 = smov 32   ;;  %s1674_s14 = smov 16   ;;  %vm530_vm10 = vcmask 1041408   ;;  %vm526_vm11 = vcmask 15360  }
   0x7   :  { %1548 = vmatmul.mubr.msk.f32.vlgmr.msra.gmra.mrb[0].mxu0 %vm37_vm1, %v24_v5  ;;  %1551 = vmatmul.mubr.msk.f32.vlgmr.msra.gmra.mrb[0].mxu1 %vm37_vm1, %v24_v5  ;;  %v311_v46 = vsub.s32 2, %v1777_v42  ;;  %v245_v47 = vsub.s32 0, %v1777_v42  ;;  %vm238_vm2 = vcmp.lt.s32.totalorder %v1779_v45, 2  ;;  %v278_v51 = vsub.s32 1, %v1777_v42  ;;  %s1675_s15 = smov 112   ;;  %s1676_s16 = smov 96  }
   0x8   :  { %30 = vperm.xlu0 %1607, %v27_v7   ;;  %607 = vmatprep.mubr.f32.mxu0 %v2505_v4  ;;  %vm304_vm3 = vcmp.lt.s32.totalorder %v1779_v45, 127  ;;  %vm271_vm4 = vcmp.lt.s32.totalorder %v1779_v45, 1  ;;  %v344_v63 = vsub.s32 3, %v1777_v42  ;;  %vm337_vm5 = vcmp.lt.s32.totalorder %v1779_v45, 126 }
   0x9   :  { %678 = vmatprep.mubr.f32.mxu1 %v2505_v4  ;;  %v1792_v52 = vrot.slane %v1786_v49, %v311_v46  ;;  %v1800_v54 = vrot.slane %v1786_v49, %v245_v47  ;;  %v1814_v57 = vrot.slane %v1786_v49, %v278_v51  ;;  %v1826_v1 = vrot.slane %v1797_v53, %v245_v47 }
   0xa   :  { %v1829_v2 = vrot.slane %v1805_v55, %v278_v51  ;;  %v1832_v3 = vrot.slane %v1810_v56, %v278_v51  ;;  %v1835_v5 = vrot.slane %v1797_v53, %v278_v51  ;;  %vm386_vm6 = vcmp.lt.s32.totalorder %v1779_v45, 32 }
   0xb   :  { %vm419_vm7 = vcmp.lt.s32.totalorder %v1779_v45, 16  ;;  %vm452_vm8 = vcmp.lt.s32.totalorder %v1779_v45, 112  ;;  %vm485_vm9 = vcmp.lt.s32.totalorder %v1779_v45, 96 }
  0x87   :  { %v31_v8 = vpop.permute.xlu0 %30 }
  0xda   :  { %v116_v9 = vpop.f32.mrb[0].mxu0  ;;  %v187_v10 = vpop.f32.mrb[0].mxu1 }
  0xdb   :  { %v117_v11 = vadd.f32 %v116_v9, %v31_v8  ;;  %v188_v12 = vadd.f32 %v187_v10, %v31_v8  ;;  %v118_v13 = vpop.f32.mrb[1].mxu0  ;;  %v189_v14 = vpop.f32.mrb[1].mxu1  ;;  %v1843_v9 = vrot.slane %v1810_v56, %v311_v46 }
  0xdc   :  { %v119_v15 = vadd.f32 %v118_v13, %v31_v8  ;;  %v190_v16 = vadd.f32 %v189_v14, %v31_v8  ;;  %v1840_v8 = vrot.slane %v1805_v55, %v311_v46  ;;  %v1849_v13 = vrot.slane %v1805_v55, %v245_v47 }
  0xdd   :  { %v1552_v17 = vmul.f32 -1.442695, %v117_v11  ;;  %v1554_v18 = vmul.f32 -1.442695, %v188_v12  ;;  %v1853_v14 = vrot.slane %v1786_v49, %v344_v63 }
  0xde   :  { %v1553_v19 = vmul.f32 -1.442695, %v119_v15  ;;  %v1555_v20 = vmul.f32 -1.442695, %v190_v16 }
  0xdf   :  { %1611 = vpow2.f32 %v1552_v17 }
  0xe0   :  { %1613 = vpow2.f32 %v1554_v18 }
  0xe1   :  { %1615 = vpow2.f32 %v1553_v19 }
  0xe2   :  { %1617 = vpow2.f32 %v1555_v20  ;;  %v1865_v20 = vrot.slane %v1810_v56, %v245_v47 }
  0xe9   :  { %v1612_v21 = vpop.eup %1611 }
  0xea   :  { %v1614_v22 = vpop.eup %1613  ;;  %v204_v23 = vadd.f32 1.0, %v1612_v21  ;;  %v1868_v21 = vrot.slane %v1805_v55, %v344_v63 }
  0xeb   :  { %v1616_v24 = vpop.eup %1615  ;;  %v206_v25 = vadd.f32 1.0, %v1614_v22  ;;  %v1871_v22 = vrot.slane %v1810_v56, %v344_v63 }
  0xec   :  { %v1618_v26 = vpop.eup %1617  ;;  %1619 = vrcp.f32 %v204_v23  ;;  %v205_v28 = vadd.f32 1.0, %v1616_v24 }
  0xed   :  { %1621 = vrcp.f32 %v206_v25  ;;  %v207_v27 = vadd.f32 1.0, %v1618_v26 }
  0xef   :  { %1623 = vrcp.f32 %v207_v27 }
  0xf0   :  { %1625 = vrcp.f32 %v205_v28 }
  0xf6   :  { %v1620_v29 = vpop.eup %1619 }
  0xf7   :  { %v1622_v30 = vpop.eup %1621  ;;  %v1733_v31 = vmul.f32 %v1620_v29, %v117_v11 }
  0xf8   :  { %v1735_v32 = vmul.f32 %v1622_v30, %v188_v12  ;;  %v1846_v12 = vrot.slane %v1797_v53, %v311_v46 }
  0xf9   :  { %v1624_v33 = vpop.eup %1623  ;;  %228 = vrot.lane.b32.xlu0 %v1733_v31, %s1669_s1 }
  0xfa   :  { %232 = vrot.lane.b32.xlu1 %v1735_v32, %s1669_s1  ;;  %v1741_v34 = vmul.f32 %v1624_v33, %v190_v16  ;;  %v1626_v35 = vpop.eup %1625 }
  0xfb   :  { %v1747_v36 = vmul.f32 %v1626_v35, %v119_v15 }
  0xfd   :  { %234 = vrot.lane.b32.xlu0 %v1741_v34, %s1669_s1 }
  0xfe   :  { %263 = vrot.lane.b32.xlu1 %v1733_v31, %s1670_s2 }
 0x101   :  { %265 = vrot.lane.b32.xlu0 %v1747_v36, %s1670_s2 }
 0x102   :  { %267 = vrot.lane.b32.xlu1 %v1735_v32, %s1670_s2 }
 0x105   :  { %269 = vrot.lane.b32.xlu0 %v1741_v34, %s1670_s2 }
 0x106   :  { %296 = vrot.lane.b32.xlu1 %v1733_v31, %s1671_s28 }
 0x109   :  { %298 = vrot.lane.b32.xlu0 %v1747_v36, %s1671_s28 }
 0x10a   :  { %300 = vrot.lane.b32.xlu1 %v1735_v32, %s1671_s28 }
 0x10d   :  { %302 = vrot.lane.b32.xlu0 %v1741_v34, %s1671_s28 }
 0x10e   :  { %329 = vrot.lane.b32.xlu1 %v1733_v31, %s1672_s29 }
 0x111   :  { %331 = vrot.lane.b32.xlu0 %v1747_v36, %s1672_s29 }
 0x112   :  { %230 = vrot.lane.b32.xlu1 %v1747_v36, %s1669_s1 }
 0x115   :  { %335 = vrot.lane.b32.xlu0 %v1741_v34, %s1672_s29 }
 0x116   :  { %333 = vrot.lane.b32.xlu1 %v1735_v32, %s1672_s29 }
 0x16b   :  { %v1773_v37 = vpop.permute.xlu0 %228 }
 0x16c   :  { %v1775_v38 = vpop.permute.xlu1 %232 }
 0x16f   :  { %v235_v40 = vpop.permute.xlu0 %234 }
 0x170   :  { %v264_v41 = vpop.permute.xlu1 %263  ;;  %v242_v59 = vsel %vm238_vm2, %v235_v40, %v1773_v37  ;;  %v239_v19 = vsel %vm238_vm2, %v1775_v38, %v235_v40 }
 0x171   :  { %v259_v6 = vadd.f32 %v1800_v54, %v242_v59 }
 0x173   :  { %v266_v43 = vpop.permute.xlu0 %265  ;;  %v362_v23 = vmax.f32 %v1733_v31, %v259_v6 }
 0x174   :  { %v268_v44 = vpop.permute.xlu1 %267  ;;  %v274_v25 = vsel %vm271_vm4, %v264_v41, %v266_v43 }
 0x175   :  { %v273_v24 = vsel %vm271_vm4, %v266_v43, %v268_v44 }
 0x176   :  { %v294_v46 = vadd.f32 %v1832_v3, %v273_v24 }
 0x177   :  { %v270_v48 = vpop.permute.xlu0 %269 }
 0x178   :  { %v297_v50 = vpop.permute.xlu1 %296  ;;  %v275_v60 = vsel %vm271_vm4, %v270_v48, %v264_v41  ;;  %v272_v26 = vsel %vm271_vm4, %v268_v44, %v270_v48  ;;  %v293_v44 = vadd.f32 %v1829_v2, %v274_v25 }
 0x179   :  { %v292_v7 = vadd.f32 %v1814_v57, %v275_v60  ;;  %v295_v51 = vadd.f32 %v1835_v5, %v272_v26 }
 0x17b   :  { %v299_v58 = vpop.permute.xlu0 %298 }
 0x17c   :  { %v301_v61 = vpop.permute.xlu1 %300  ;;  %v307_v62 = vsel %vm304_vm3, %v297_v50, %v299_v58 }
 0x17d   :  { %v325_v0 = vadd.f32 %v1792_v52, %v307_v62  ;;  %v306_v15 = vsel %vm304_vm3, %v299_v58, %v301_v61  ;;  %v1901_v58 = vrot.slane %v1797_v53, %v344_v63 }
 0x17e   :  { %v326_v28 = vadd.f32 %v1840_v8, %v306_v15 }
 0x17f   :  { %v303_v10 = vpop.permute.xlu0 %302  ;;  %v366_v16 = vmax.f32 %v292_v7, %v325_v0 }
 0x180   :  { %v330_v11 = vpop.permute.xlu1 %329  ;;  %v305_v17 = vsel %vm304_vm3, %v301_v61, %v303_v10  ;;  %v308_v18 = vsel %vm304_vm3, %v303_v10, %v297_v50  ;;  %v262_v50 = vadd.f32 %v1826_v1, %v239_v19  ;;  %v367_v59 = vmax.f32 %v293_v44, %v326_v28 }
 0x181   :  { %v327_v29 = vadd.f32 %v1843_v9, %v305_v17  ;;  %v328_v30 = vadd.f32 %v1846_v12, %v308_v18  ;;  %v370_v41 = vmax.f32 %v362_v23, %v366_v16 }
 0x182   :  { %v365_v19 = vmax.f32 %v1741_v34, %v262_v50 }
 0x183   :  { %v332_v27 = vpop.permute.xlu0 %331  ;;  %v368_v60 = vmax.f32 %v294_v46, %v327_v29  ;;  %v369_v6 = vmax.f32 %v295_v51, %v328_v30 }
 0x184   :  { %v231_v33 = vpop.permute.xlu1 %230  ;;  %v340_v35 = vsel %vm337_vm5, %v330_v11, %v332_v27 }
 0x185   :  { %v240_v39 = vsel %vm238_vm2, %v231_v33, %v1775_v38  ;;  %v241_v40 = vsel %vm238_vm2, %v1773_v37, %v231_v33  ;;  %v358_v43 = vadd.f32 %v1853_v14, %v340_v35  ;;  %v373_v26 = vmax.f32 %v365_v19, %v369_v6 }
 0x186   :  { %v260_v47 = vadd.f32 %v1849_v13, %v241_v40  ;;  %v261_v48 = vadd.f32 %v1865_v20, %v240_v39  ;;  %v393_v40 = vsub.s32 4, %v1777_v42 }
 0x187   :  { %v1898_v38 = vmax.f32 %v370_v41, %v358_v43  ;;  %v336_v37 = vpop.permute.xlu0 %335  ;;  %v459_v41 = vsub.s32 6, %v1777_v42  ;;  %v426_v43 = vsub.s32 5, %v1777_v42 }
 0x188   :  { %v363_v61 = vmax.f32 %v1747_v36, %v260_v47  ;;  %v364_v62 = vmax.f32 %v1735_v32, %v261_v48  ;;  %v334_v0 = vpop.permute.xlu1 %333  ;;  %v341_v15 = vsel %vm337_vm5, %v336_v37, %v330_v11  ;;  %v1958_v47 = vrot.slane %v1805_v55, %v393_v40 }
 0x189   :  { %v339_v7 = vsel %vm337_vm5, %v332_v27, %v334_v0  ;;  %v338_v10 = vsel %vm337_vm5, %v334_v0, %v336_v37  ;;  %378 = vrot.lane.b32.xlu1 %v1898_v38, %s1673_s5  ;;  %v361_v24 = vadd.f32 %v1901_v58, %v341_v15  ;;  %v1961_v48 = vrot.slane %v1810_v56, %v393_v40 }
 0x18a   :  { %v359_v63 = vadd.f32 %v1868_v21, %v339_v7  ;;  %v371_v16 = vmax.f32 %v363_v61, %v367_v59  ;;  %v372_v17 = vmax.f32 %v364_v62, %v368_v60  ;;  %v360_v18 = vadd.f32 %v1871_v22, %v338_v10 }
 0x18b   :  { %v1925_v11 = vmax.f32 %v373_v26, %v361_v24  ;;  %v1964_v50 = vrot.slane %v1786_v49, %v393_v40  ;;  %v1967_v51 = vrot.slane %v1797_v53, %v393_v40  ;;  %v1972_v37 = vrot.slane %v1786_v49, %v459_v41 }
 0x18c   :  { %v1916_v23 = vmax.f32 %v371_v16, %v359_v63  ;;  %v1919_v25 = vmax.f32 %v372_v17, %v360_v18  ;;  %v1975_v59 = vrot.slane %v1805_v55, %v459_v41  ;;  %v1978_v60 = vrot.slane %v1805_v55, %v426_v43 }
 0x18d   :  { %2513 = vst [vmem:[#allocation5_spill] sm:$0xff] %v1972_v37  ;;  %v1981_v61 = vrot.slane %v1810_v56, %v426_v43  ;;  %v1984_v62 = vrot.slane %v1786_v49, %v426_v43  ;;  %v492_v0 = vsub.s32 7, %v1777_v42  ;;  %v1990_v7 = vrot.slane %v1797_v53, %v426_v43 }
 0x18e   :  { %380 = vrot.lane.b32.xlu0 %v1916_v23, %s1673_s5  ;;  %382 = vrot.lane.b32.xlu1 %v1919_v25, %s1673_s5  ;;  %2514 = vst [vmem:[#allocation6_spill] sm:$0xff] %v1975_v59  ;;  %2515 = vst [vmem:[#allocation7_spill] sm:$0xff] %v1978_v60  ;;  %v1995_v16 = vrot.slane %v1810_v56, %v459_v41  ;;  %v2008_v40 = vrot.slane %v1797_v53, %v459_v41 }
 0x18f   :  { %v2016_v4 = vrot.slane %v1786_v49, %v492_v0 }
 0x192   :  { %384 = vrot.lane.b32.xlu0 %v1925_v11, %s1673_s5  ;;  %411 = vrot.lane.b32.xlu1 %v1898_v38, %s1674_s14 }
 0x196   :  { %413 = vrot.lane.b32.xlu0 %v1916_v23, %s1674_s14  ;;  %415 = vrot.lane.b32.xlu1 %v1919_v25, %s1674_s14 }
 0x19a   :  { %417 = vrot.lane.b32.xlu0 %v1925_v11, %s1674_s14  ;;  %444 = vrot.lane.b32.xlu1 %v1898_v38, %s1675_s15 }
 0x19e   :  { %446 = vrot.lane.b32.xlu0 %v1916_v23, %s1675_s15  ;;  %448 = vrot.lane.b32.xlu1 %v1919_v25, %s1675_s15 }
 0x1a2   :  { %450 = vrot.lane.b32.xlu0 %v1925_v11, %s1675_s15  ;;  %477 = vrot.lane.b32.xlu1 %v1898_v38, %s1676_s16 }
 0x1a6   :  { %479 = vrot.lane.b32.xlu0 %v1916_v23, %s1676_s16  ;;  %481 = vrot.lane.b32.xlu1 %v1919_v25, %s1676_s16 }
 0x1aa   :  { %483 = vrot.lane.b32.xlu0 %v1925_v11, %s1676_s16 }
 0x1fb   :  { %v379_v27 = vpop.permute.xlu1 %378 }
 0x200   :  { %v383_v28 = vpop.permute.xlu1 %382  ;;  %v381_v29 = vpop.permute.xlu0 %380 }
 0x201   :  { %v389_v17 = vsel %vm386_vm6, %v379_v27, %v381_v29 }
 0x204   :  { %v412_v30 = vpop.permute.xlu1 %411  ;;  %v385_v33 = vpop.permute.xlu0 %384 }
 0x205   :  { %v390_v6 = vsel %vm386_vm6, %v385_v33, %v379_v27  ;;  %v388_v27 = vsel %vm386_vm6, %v381_v29, %v383_v28 }
 0x208   :  { %v416_v35 = vpop.permute.xlu1 %415  ;;  %v414_v39 = vpop.permute.xlu0 %413 }
 0x209   :  { %v422_v42 = vsel %vm419_vm7, %v412_v30, %v414_v39  ;;  %v421_v41 = vsel %vm419_vm7, %v414_v39, %v416_v35  ;;  %v2033_v39 = vrot.slane %v1805_v55, %v492_v0  ;;  %v2045_v55 = vrot.slane %v1797_v53, %v492_v0 }
 0x20c   :  { %v445_v44 = vpop.permute.xlu1 %444  ;;  %v418_v46 = vpop.permute.xlu0 %417 }
 0x20d   :  { %v423_v10 = vsel %vm419_vm7, %v418_v46, %v412_v30  ;;  %v407_v30 = vadd.f32 %v1964_v50, %v390_v6  ;;  %v420_v29 = vsel %vm419_vm7, %v416_v35, %v418_v46  ;;  %v442_v35 = vadd.f32 %v1981_v61, %v421_v41 }
 0x20e   :  { %v440_v43 = vadd.f32 %v1984_v62, %v423_v10  ;;  %v2039_v46 = vrot.slane %v1810_v56, %v492_v0 }
 0x210   :  { %v449_v15 = vpop.permute.xlu1 %448  ;;  %v447_v63 = vpop.permute.xlu0 %446 }
 0x211   :  { %v454_v18 = vsel %vm452_vm8, %v447_v63, %v449_v15  ;;  %v455_v19 = vsel %vm452_vm8, %v445_v44, %v447_v63  ;;  %v408_v63 = vadd.f32 %v1958_v47, %v389_v17 }
 0x212   :  { %v473_v24 = vadd.f32 %v1972_v37, %v455_v19  ;;  %v474_v26 = vadd.f32 %v1975_v59, %v454_v18  ;;  %v387_v18 = vsel %vm386_vm6, %v383_v28, %v385_v33  ;;  %v441_v19 = vadd.f32 %v1978_v60, %v422_v42 }
 0x213   :  { %v409_v42 = vadd.f32 %v1961_v48, %v388_v27  ;;  %v510_v60 = vmax.f32 %v1898_v38, %v407_v30 }
 0x214   :  { %v478_v59 = vpop.permute.xlu1 %477  ;;  %v451_v37 = vpop.permute.xlu0 %450  ;;  %v514_v6 = vmax.f32 %v440_v43, %v473_v24  ;;  %v515_v17 = vmax.f32 %v441_v19, %v474_v26 }
 0x215   :  { %v453_v49 = vsel %vm452_vm8, %v449_v15, %v451_v37  ;;  %v456_v10 = vsel %vm452_vm8, %v451_v37, %v445_v44  ;;  %v511_v15 = vmax.f32 %v1916_v23, %v408_v63  ;;  %v410_v44 = vadd.f32 %v1967_v51, %v387_v18 }
 0x216   :  { %v475_v28 = vadd.f32 %v1995_v16, %v453_v49  ;;  %v476_v33 = vadd.f32 %v2008_v40, %v456_v10  ;;  %v443_v37 = vadd.f32 %v1990_v7, %v420_v29  ;;  %v518_v27 = vmax.f32 %v510_v60, %v514_v6 }
 0x217   :  { %v519_v41 = vmax.f32 %v511_v15, %v515_v17  ;;  %v512_v18 = vmax.f32 %v1919_v25, %v409_v42  ;;  %v513_v19 = vmax.f32 %v1925_v11, %v410_v44  ;;  %v225_v11 = vld [vmem:[%s2501_s3 + $0x4] sm:$0xf] }
 0x218   :  { %v482_v24 = vpop.permute.xlu1 %481  ;;  %v480_v26 = vpop.permute.xlu0 %479  ;;  %v516_v43 = vmax.f32 %v442_v35, %v475_v28  ;;  %v517_v30 = vmax.f32 %v443_v37, %v476_v33  ;;  %v2516_v33 = vmov 0.0  }
 0x219   :  { %v487_v38 = vsel %vm485_vm9, %v480_v26, %v482_v24  ;;  %v488_v56 = vsel %vm485_vm9, %v478_v59, %v480_v26 }
 0x21a   :  { %v506_v23 = vadd.f32 %v2016_v4, %v488_v56  ;;  %v507_v63 = vadd.f32 %v2033_v39, %v487_v38  ;;  %v520_v29 = vmax.f32 %v512_v18, %v516_v43  ;;  %v521_v10 = vmax.f32 %v513_v19, %v517_v30 }
 0x21c   :  { %v2055_v53 = vmax.f32 %v518_v27, %v506_v23  ;;  %v2057_v0 = vmax.f32 %v519_v41, %v507_v63  ;;  %v484_v60 = vpop.permute.xlu0 %483 }
 0x21d   :  { %v486_v6 = vsel %vm485_vm9, %v482_v24, %v484_v60  ;;  %v489_v49 = vsel %vm485_vm9, %v484_v60, %v478_v59 }
 0x21e   :  { %v508_v17 = vadd.f32 %v2039_v46, %v486_v6  ;;  %v509_v25 = vadd.f32 %v2045_v55, %v489_v49  ;;  %842 = vrot.lane.b32.xlu1 %v2055_v53, %s1669_s1  ;;  %844 = vrot.lane.b32.xlu0 %v2057_v0, %s1669_s1 }
 0x21f   :  { %1556 = vmatprep.subr.msk.mxu0 %vm530_vm10, %v2057_v0 }
 0x220   :  { %v2074_v59 = vmax.f32 %v520_v29, %v508_v17  ;;  %v2076_v28 = vmax.f32 %v521_v10, %v509_v25  ;;  %1557 = vmatpush1.msk.msra.mxu0 %vm530_vm10, %v2055_v53 }
 0x221   :  { %1562 = vmatprep.subr.msk.mxu0 %vm530_vm10, %v1747_v36  ;;  %1558 = vmatmul.mubr.msk.f32.vlgmr.msra.gmra.mrb[2].mxu0 %vm526_vm11, %v225_v11 }
 0x222   :  { %1563 = vmatpush1.msk.msra.mxu0 %vm530_vm10, %v1733_v31  ;;  %848 = vrot.lane.b32.xlu0 %v2076_v28, %s1669_s1 }
 0x223   :  { %1559 = vmatprep.subr.msk.mxu1 %vm530_vm10, %v2076_v28  ;;  %846 = vrot.lane.b32.xlu1 %v2074_v59, %s1669_s1 }
 0x224   :  { %1560 = vmatpush1.msk.msra.mxu1 %vm530_vm10, %v2074_v59  ;;  %764 = vmatprep.mubr.f32.mxu0 %v2516_v33 }
 0x225   :  { %1565 = vmatprep.subr.msk.mxu1 %vm530_vm10, %v1741_v34  ;;  %1561 = vmatmul.mubr.msk.f32.vlgmr.msra.gmra.mrb[2].mxu1 %vm526_vm11, %v225_v11 }
 0x226   :  { %1566 = vmatpush1.msk.msra.mxu1 %vm530_vm10, %v1735_v32  ;;  %860 = vrot.lane.b32.xlu0 %v2057_v0, %s1670_s2 }
 0x227   :  { %858 = vrot.lane.b32.xlu1 %v2055_v53, %s1670_s2  ;;  %835 = vmatprep.mubr.f32.mxu1 %v2516_v33 }
 0x22a   :  { %864 = vrot.lane.b32.xlu0 %v2076_v28, %s1670_s2 }
 0x22b   :  { %862 = vrot.lane.b32.xlu1 %v2074_v59, %s1670_s2 }
 0x22e   :  { %876 = vrot.lane.b32.xlu0 %v2057_v0, %s1671_s28 }
 0x22f   :  { %874 = vrot.lane.b32.xlu1 %v2055_v53, %s1671_s28 }
 0x232   :  { %880 = vrot.lane.b32.xlu0 %v2076_v28, %s1671_s28 }
 0x233   :  { %878 = vrot.lane.b32.xlu1 %v2074_v59, %s1671_s28 }
 0x236   :  { %892 = vrot.lane.b32.xlu0 %v2057_v0, %s1672_s29 }
 0x237   :  { %890 = vrot.lane.b32.xlu1 %v2055_v53, %s1672_s29 }
 0x23a   :  { %896 = vrot.lane.b32.xlu0 %v2076_v28, %s1672_s29 }
 0x23b   :  { %894 = vrot.lane.b32.xlu1 %v2074_v59, %s1672_s29 }
 0x290   :  { %v843_v31 = vpop.permute.xlu1 %842  ;;  %v845_v32 = vpop.permute.xlu0 %844 }
 0x291   :  { %v852_v30 = vsel %vm238_vm2, %v843_v31, %v845_v32 }
 0x292   :  { %v855_v11 = vadd.f32 %v852_v30, %v1849_v13 }
 0x294   :  { %v849_v34 = vpop.permute.xlu0 %848 }
 0x295   :  { %v847_v36 = vpop.permute.xlu1 %846  ;;  %v853_v26 = vsel %vm238_vm2, %v849_v34, %v843_v31 }
 0x296   :  { %v851_v41 = vsel %vm238_vm2, %v845_v32, %v847_v36  ;;  %v854_v23 = vadd.f32 %v853_v26, %v1800_v54 }
 0x297   :  { %v856_v31 = vadd.f32 %v851_v41, %v1865_v20 }
 0x298   :  { %v861_v42 = vpop.permute.xlu0 %860 }
 0x299   :  { %v859_v35 = vpop.permute.xlu1 %858 }
 0x29a   :  { %v868_v19 = vsel %vm271_vm4, %v859_v35, %v861_v42 }
 0x29c   :  { %v865_v15 = vpop.permute.xlu0 %864 }
 0x29d   :  { %v863_v44 = vpop.permute.xlu1 %862  ;;  %v869_v43 = vsel %vm271_vm4, %v865_v15, %v859_v35  ;;  %v871_v35 = vadd.f32 %v868_v19, %v1829_v2 }
 0x29e   :  { %v870_v63 = vadd.f32 %v869_v43, %v1814_v57  ;;  %v867_v60 = vsel %vm271_vm4, %v861_v42, %v863_v44  ;;  %v906_v42 = vmax.f32 %v2055_v53, %v854_v23  ;;  %v866_v26 = vsel %vm271_vm4, %v863_v44, %v865_v15 }
 0x29f   :  { %v873_v23 = vadd.f32 %v866_v26, %v1835_v5  ;;  %v908_v15 = vmax.f32 %v2074_v59, %v856_v31 }
 0x2a0   :  { %v877_v37 = vpop.permute.xlu0 %876 }
 0x2a1   :  { %v875_v24 = vpop.permute.xlu1 %874 }
 0x2a2   :  { %v884_v27 = vsel %vm304_vm3, %v875_v24, %v877_v37 }
 0x2a3   :  { %v886_v38 = vadd.f32 %v884_v27, %v1792_v52 }
 0x2a4   :  { %v881_v56 = vpop.permute.xlu0 %880 }
 0x2a5   :  { %v879_v18 = vpop.permute.xlu1 %878  ;;  %v910_v49 = vmax.f32 %v870_v63, %v886_v38  ;;  %v885_v17 = vsel %vm304_vm3, %v881_v56, %v875_v24  ;;  %v850_v24 = vsel %vm238_vm2, %v847_v36, %v849_v34 }
 0x2a6   :  { %v883_v29 = vsel %vm304_vm3, %v877_v37, %v879_v18  ;;  %v882_v6 = vsel %vm304_vm3, %v879_v18, %v881_v56  ;;  %v872_v37 = vadd.f32 %v867_v60, %v1832_v3  ;;  %v889_v27 = vadd.f32 %v885_v17, %v1846_v12 }
 0x2a7   :  { %v887_v10 = vadd.f32 %v883_v29, %v1840_v8  ;;  %v888_v25 = vadd.f32 %v882_v6, %v1843_v9  ;;  %v914_v41 = vmax.f32 %v906_v42, %v910_v49  ;;  %v907_v18 = vmax.f32 %v2057_v0, %v855_v11 }
 0x2a8   :  { %v893_v32 = vpop.permute.xlu0 %892  ;;  %v857_v44 = vadd.f32 %v850_v24, %v1826_v1  ;;  %v913_v19 = vmax.f32 %v873_v23, %v889_v27 }
 0x2a9   :  { %v891_v43 = vpop.permute.xlu1 %890  ;;  %v911_v56 = vmax.f32 %v871_v35, %v887_v10  ;;  %v912_v30 = vmax.f32 %v872_v37, %v888_v25 }
 0x2aa   :  { %v900_v38 = vsel %vm337_vm5, %v891_v43, %v893_v32  ;;  %v909_v17 = vmax.f32 %v2076_v28, %v857_v44  ;;  %v224_v28 = vld [vmem:[%s2501_s3] sm:$0xf] }
 0x2ab   :  { %v902_v53 = vadd.f32 %v900_v38, %v1853_v14  ;;  %v915_v0 = vmax.f32 %v907_v18, %v911_v56  ;;  %v916_v10 = vmax.f32 %v908_v15, %v912_v30  ;;  %1564 = vmatmul.mubr.msk.f32.vlgmr.msra.gmra.mrb[2].mxu0 %vm526_vm11, %v224_v28  ;;  %1567 = vmatmul.mubr.msk.f32.vlgmr.msra.gmra.mrb[2].mxu1 %vm526_vm11, %v224_v28 }
 0x2ac   :  { %v897_v63 = vpop.permute.xlu0 %896  ;;  %1081 = vmatprep.mubr.f32.mxu0 %v2516_v33  ;;  %1152 = vmatprep.mubr.f32.mxu1 %v2516_v33 }
 0x2ad   :  { %v2166_v34 = vmax.f32 %v914_v41, %v902_v53  ;;  %v895_v36 = vpop.permute.xlu1 %894  ;;  %v901_v6 = vsel %vm337_vm5, %v897_v63, %v891_v43 }
 0x2ae   :  { %v899_v60 = vsel %vm337_vm5, %v893_v32, %v895_v36  ;;  %v898_v29 = vsel %vm337_vm5, %v895_v36, %v897_v63  ;;  %v905_v11 = vadd.f32 %v901_v6, %v1901_v58  ;;  %v917_v32 = vmax.f32 %v909_v17, %v913_v19  ;;  %v2517_v19 = vld [vmem:[#allocation5_spill] sm:$0xff] }
 0x2af   :  { %v903_v49 = vadd.f32 %v899_v60, %v1868_v21  ;;  %v904_v59 = vadd.f32 %v898_v29, %v1871_v22  ;;  %922 = vrot.lane.b32.xlu1 %v2166_v34, %s1673_s5  ;;  %v2518_v29 = vld [vmem:[#allocation6_spill] sm:$0xff] }
 0x2b0   :  { %v2188_v42 = vmax.f32 %v917_v32, %v905_v11  ;;  %v2519_v32 = vld [vmem:[#allocation7_spill] sm:$0xff] }
 0x2b1   :  { %v2179_v25 = vmax.f32 %v915_v0, %v903_v49  ;;  %v2182_v31 = vmax.f32 %v916_v10, %v904_v59 }
 0x2b3   :  { %924 = vrot.lane.b32.xlu0 %v2179_v25, %s1673_s5  ;;  %926 = vrot.lane.b32.xlu1 %v2182_v31, %s1673_s5 }
 0x2b7   :  { %928 = vrot.lane.b32.xlu0 %v2188_v42, %s1673_s5  ;;  %938 = vrot.lane.b32.xlu1 %v2166_v34, %s1674_s14 }
 0x2bb   :  { %940 = vrot.lane.b32.xlu0 %v2179_v25, %s1674_s14  ;;  %942 = vrot.lane.b32.xlu1 %v2182_v31, %s1674_s14 }
 0x2bf   :  { %944 = vrot.lane.b32.xlu0 %v2188_v42, %s1674_s14  ;;  %954 = vrot.lane.b32.xlu1 %v2166_v34, %s1675_s15 }
 0x2c3   :  { %956 = vrot.lane.b32.xlu0 %v2179_v25, %s1675_s15  ;;  %958 = vrot.lane.b32.xlu1 %v2182_v31, %s1675_s15 }
 0x2c7   :  { %960 = vrot.lane.b32.xlu0 %v2188_v42, %s1675_s15  ;;  %970 = vrot.lane.b32.xlu1 %v2166_v34, %s1676_s16 }
 0x2cb   :  { %972 = vrot.lane.b32.xlu0 %v2179_v25, %s1676_s16  ;;  %974 = vrot.lane.b32.xlu1 %v2182_v31, %s1676_s16 }
 0x2cf   :  { %976 = vrot.lane.b32.xlu0 %v2188_v42, %s1676_s16 }
 0x321   :  { %v923_v35 = vpop.permute.xlu1 %922 }
 0x325   :  { %v927_v37 = vpop.permute.xlu1 %926  ;;  %v925_v26 = vpop.permute.xlu0 %924 }
 0x326   :  { %v932_v18 = vsel %vm386_vm6, %v923_v35, %v925_v26  ;;  %v931_v49 = vsel %vm386_vm6, %v925_v26, %v927_v37 }
 0x327   :  { %v935_v59 = vadd.f32 %v932_v18, %v1958_v47 }
 0x329   :  { %v939_v43 = vpop.permute.xlu1 %938  ;;  %v929_v24 = vpop.permute.xlu0 %928 }
 0x32a   :  { %v933_v41 = vsel %vm386_vm6, %v929_v24, %v923_v35  ;;  %v930_v17 = vsel %vm386_vm6, %v927_v37, %v929_v24 }
 0x32b   :  { %v934_v0 = vadd.f32 %v933_v41, %v1964_v50 }
 0x32d   :  { %v943_v27 = vpop.permute.xlu1 %942  ;;  %v941_v38 = vpop.permute.xlu0 %940 }
 0x32e   :  { %v948_v15 = vsel %vm419_vm7, %v939_v43, %v941_v38  ;;  %v947_v11 = vsel %vm419_vm7, %v941_v38, %v943_v27  ;;  %v936_v38 = vadd.f32 %v931_v49, %v1961_v48 }
 0x32f   :  { %v951_v28 = vadd.f32 %v948_v15, %v2519_v32  ;;  %v986_v15 = vmax.f32 %v2166_v34, %v934_v0 }
 0x331   :  { %v955_v56 = vpop.permute.xlu1 %954  ;;  %v945_v30 = vpop.permute.xlu0 %944 }
 0x332   :  { %v949_v53 = vsel %vm419_vm7, %v945_v30, %v939_v43 }
 0x333   :  { %v950_v10 = vadd.f32 %v949_v53, %v1984_v62 }
 0x335   :  { %v959_v23 = vpop.permute.xlu1 %958  ;;  %v957_v63 = vpop.permute.xlu0 %956 }
 0x336   :  { %v963_v44 = vsel %vm452_vm8, %v957_v63, %v959_v23  ;;  %v964_v36 = vsel %vm452_vm8, %v955_v56, %v957_v63  ;;  %v946_v63 = vsel %vm419_vm7, %v943_v27, %v945_v30  ;;  %v987_v27 = vmax.f32 %v2179_v25, %v935_v59 }
 0x337   :  { %v966_v60 = vadd.f32 %v964_v36, %v2517_v19  ;;  %v967_v6 = vadd.f32 %v963_v44, %v2518_v29  ;;  %v952_v44 = vadd.f32 %v947_v11, %v1981_v61  ;;  %v937_v30 = vadd.f32 %v930_v17, %v1967_v51 }
 0x338   :  { %v988_v59 = vmax.f32 %v2182_v31, %v936_v38 }
 0x339   :  { %v971_v35 = vpop.permute.xlu1 %970  ;;  %v961_v43 = vpop.permute.xlu0 %960  ;;  %v990_v26 = vmax.f32 %v950_v10, %v966_v60  ;;  %v991_v18 = vmax.f32 %v951_v28, %v967_v6  ;;  %v989_v17 = vmax.f32 %v2188_v42, %v937_v30 }
 0x33a   :  { %v962_v41 = vsel %vm452_vm8, %v959_v23, %v961_v43  ;;  %v965_v53 = vsel %vm452_vm8, %v961_v43, %v955_v56  ;;  %v953_v23 = vadd.f32 %v946_v63, %v1990_v7 }
 0x33b   :  { %v968_v37 = vadd.f32 %v962_v41, %v1995_v16  ;;  %v969_v24 = vadd.f32 %v965_v53, %v2008_v40  ;;  %v994_v6 = vmax.f32 %v986_v15, %v990_v26  ;;  %v995_v34 = vmax.f32 %v987_v27, %v991_v18 }
 0x33d   :  { %v975_v36 = vpop.permute.xlu1 %974  ;;  %v973_v60 = vpop.permute.xlu0 %972  ;;  %v992_v56 = vmax.f32 %v952_v44, %v968_v37  ;;  %v993_v28 = vmax.f32 %v953_v23, %v969_v24 }
 0x33e   :  { %v979_v10 = vsel %vm485_vm9, %v973_v60, %v975_v36  ;;  %v980_v49 = vsel %vm485_vm9, %v971_v35, %v973_v60 }
 0x33f   :  { %v982_v0 = vadd.f32 %v980_v49, %v2016_v4  ;;  %v983_v25 = vadd.f32 %v979_v10, %v2033_v39  ;;  %v996_v26 = vmax.f32 %v988_v59, %v992_v56  ;;  %v997_v18 = vmax.f32 %v989_v17, %v993_v28 }
 0x341   :  { %v2269_v11 = vmax.f32 %v994_v6, %v982_v0  ;;  %v2271_v43 = vmax.f32 %v995_v34, %v983_v25  ;;  %v977_v63 = vpop.permute.xlu0 %976 }
 0x342   :  { %v978_v41 = vsel %vm485_vm9, %v975_v36, %v977_v63  ;;  %v981_v53 = vsel %vm485_vm9, %v977_v63, %v971_v35 }
 0x343   :  { %v984_v37 = vadd.f32 %v978_v41, %v2039_v46  ;;  %v985_v24 = vadd.f32 %v981_v53, %v2045_v55  ;;  %1163 = vrot.lane.b32.xlu1 %v2269_v11, %s1669_s1  ;;  %1165 = vrot.lane.b32.xlu0 %v2271_v43, %s1669_s1 }
 0x344   :  { %1568 = vmatprep.subr.msk.mxu0 %vm530_vm10, %v2271_v43 }
 0x345   :  { %v2285_v31 = vmax.f32 %v996_v26, %v984_v37  ;;  %v2287_v42 = vmax.f32 %v997_v18, %v985_v24  ;;  %1569 = vmatpush1.msk.msra.mxu0 %vm530_vm10, %v2269_v11 }
 0x347   :  { %1169 = vrot.lane.b32.xlu0 %v2287_v42, %s1669_s1  ;;  %1571 = vmatprep.subr.msk.mxu1 %vm530_vm10, %v2287_v42 }
 0x348   :  { %1167 = vrot.lane.b32.xlu1 %v2285_v31, %s1669_s1  ;;  %1572 = vmatpush1.msk.msra.mxu1 %vm530_vm10, %v2285_v31 }
 0x34b   :  { %1181 = vrot.lane.b32.xlu0 %v2271_v43, %s1670_s2 }
 0x34c   :  { %1179 = vrot.lane.b32.xlu1 %v2269_v11, %s1670_s2 }
 0x34f   :  { %1185 = vrot.lane.b32.xlu0 %v2287_v42, %s1670_s2 }
 0x350   :  { %1183 = vrot.lane.b32.xlu1 %v2285_v31, %s1670_s2 }
 0x353   :  { %1197 = vrot.lane.b32.xlu0 %v2271_v43, %s1671_s28 }
 0x354   :  { %1195 = vrot.lane.b32.xlu1 %v2269_v11, %s1671_s28 }
 0x357   :  { %1201 = vrot.lane.b32.xlu0 %v2287_v42, %s1671_s28 }
 0x358   :  { %1199 = vrot.lane.b32.xlu1 %v2285_v31, %s1671_s28 }
 0x35b   :  { %1213 = vrot.lane.b32.xlu0 %v2271_v43, %s1672_s29 }
 0x35c   :  { %1211 = vrot.lane.b32.xlu1 %v2269_v11, %s1672_s29 }
 0x35f   :  { %1217 = vrot.lane.b32.xlu0 %v2287_v42, %s1672_s29 }
 0x360   :  { %1215 = vrot.lane.b32.xlu1 %v2285_v31, %s1672_s29 }
 0x3b5   :  { %v1164_v35 = vpop.permute.xlu1 %1163  ;;  %v1166_v38 = vpop.permute.xlu0 %1165 }
 0x3b6   :  { %v1173_v0 = vsel %vm238_vm2, %v1164_v35, %v1166_v38 }
 0x3b7   :  { %v1176_v24 = vadd.f32 %v1173_v0, %v1849_v13 }
 0x3b9   :  { %v1170_v15 = vpop.permute.xlu0 %1169 }
 0x3ba   :  { %v1168_v44 = vpop.permute.xlu1 %1167  ;;  %v1174_v6 = vsel %vm238_vm2, %v1170_v15, %v1164_v35 }
 0x3bb   :  { %v1172_v25 = vsel %vm238_vm2, %v1166_v38, %v1168_v44  ;;  %v1175_v59 = vadd.f32 %v1174_v6, %v1800_v54 }
 0x3bc   :  { %v1177_v35 = vadd.f32 %v1172_v25, %v1865_v20 }
 0x3bd   :  { %v1182_v27 = vpop.permute.xlu0 %1181 }
 0x3be   :  { %v1180_v30 = vpop.permute.xlu1 %1179 }
 0x3bf   :  { %v1189_v26 = vsel %vm271_vm4, %v1180_v30, %v1182_v27 }
 0x3c1   :  { %v1186_v23 = vpop.permute.xlu0 %1185 }
 0x3c2   :  { %v1184_v36 = vpop.permute.xlu1 %1183  ;;  %v1190_v10 = vsel %vm271_vm4, %v1186_v23, %v1180_v30  ;;  %v1192_v30 = vadd.f32 %v1189_v26, %v1829_v2 }
 0x3c3   :  { %v1191_v17 = vadd.f32 %v1190_v10, %v1814_v57  ;;  %v1188_v41 = vsel %vm271_vm4, %v1182_v27, %v1184_v36  ;;  %v1227_v27 = vmax.f32 %v2269_v11, %v1175_v59  ;;  %v1187_v6 = vsel %vm271_vm4, %v1184_v36, %v1186_v23 }
 0x3c4   :  { %v1194_v2 = vadd.f32 %v1187_v6, %v1835_v5  ;;  %v1229_v23 = vmax.f32 %v2285_v31, %v1177_v35 }
 0x3c5   :  { %v1198_v60 = vpop.permute.xlu0 %1197 }
 0x3c6   :  { %v1196_v56 = vpop.permute.xlu1 %1195 }
 0x3c7   :  { %v1205_v49 = vsel %vm304_vm3, %v1196_v56, %v1198_v60 }
 0x3c8   :  { %v1207_v28 = vadd.f32 %v1205_v49, %v1792_v52 }
 0x3c9   :  { %v1202_v34 = vpop.permute.xlu0 %1201 }
 0x3ca   :  { %v1200_v63 = vpop.permute.xlu1 %1199  ;;  %v1231_v18 = vmax.f32 %v1191_v17, %v1207_v28  ;;  %v1206_v54 = vsel %vm304_vm3, %v1202_v34, %v1196_v56  ;;  %v1171_v56 = vsel %vm238_vm2, %v1168_v44, %v1170_v15  ;;  %v1228_v28 = vmax.f32 %v2271_v43, %v1176_v24 }
 0x3cb   :  { %v1204_v52 = vsel %vm304_vm3, %v1198_v60, %v1200_v63  ;;  %v1203_v53 = vsel %vm304_vm3, %v1200_v63, %v1202_v34  ;;  %v1193_v60 = vadd.f32 %v1188_v41, %v1832_v3  ;;  %v1178_v36 = vadd.f32 %v1171_v56, %v1826_v1 }
 0x3cc   :  { %v1208_v37 = vadd.f32 %v1204_v52, %v1840_v8  ;;  %v1209_v57 = vadd.f32 %v1203_v53, %v1843_v9  ;;  %v1210_v9 = vadd.f32 %v1206_v54, %v1846_v12  ;;  %v1235_v49 = vmax.f32 %v1227_v27, %v1231_v18 }
 0x3cd   :  { %v1214_v38 = vpop.permute.xlu0 %1213  ;;  %v1230_v1 = vmax.f32 %v2287_v42, %v1178_v36 }
 0x3ce   :  { %v1212_v8 = vpop.permute.xlu1 %1211  ;;  %v1232_v20 = vmax.f32 %v1192_v30, %v1208_v37  ;;  %v1233_v10 = vmax.f32 %v1193_v60, %v1209_v57  ;;  %v1234_v44 = vmax.f32 %v1194_v2, %v1210_v9 }
 0x3cf   :  { %v1221_v13 = vsel %vm337_vm5, %v1212_v8, %v1214_v38 }
 0x3d0   :  { %v1223_v11 = vadd.f32 %v1221_v13, %v1853_v14  ;;  %v1236_v43 = vmax.f32 %v1228_v28, %v1232_v20  ;;  %v1237_v25 = vmax.f32 %v1229_v23, %v1233_v10  ;;  %v1238_v26 = vmax.f32 %v1230_v1, %v1234_v44 }
 0x3d1   :  { %v1218_v3 = vpop.permute.xlu0 %1217 }
 0x3d2   :  { %v2365_v15 = vmax.f32 %v1235_v49, %v1223_v11  ;;  %v1216_v12 = vpop.permute.xlu1 %1215  ;;  %v1222_v5 = vsel %vm337_vm5, %v1218_v3, %v1212_v8 }
 0x3d3   :  { %v1220_v34 = vsel %vm337_vm5, %v1214_v38, %v1216_v12  ;;  %v1219_v0 = vsel %vm337_vm5, %v1216_v12, %v1218_v3  ;;  %v1226_v17 = vadd.f32 %v1222_v5, %v1901_v58  ;;  %v1484_v58 = vld [vmem:[%s2502_s4] sm:$0xf] }
 0x3d4   :  { %v1224_v14 = vadd.f32 %v1220_v34, %v1868_v21  ;;  %v1225_v31 = vadd.f32 %v1219_v0, %v1871_v22  ;;  %1243 = vrot.lane.b32.xlu1 %v2365_v15, %s1673_s5  ;;  %v226_v22 = vld [vmem:[%s2501_s3 + $0x8] sm:$0xf] }
 0x3d5   :  { %v2387_v21 = vmax.f32 %v1238_v26, %v1226_v17  ;;  %1570 = vmatmul.mubr.msk.f32.vlgmr.msra.gmra.mrb[2].mxu0 %vm526_vm11, %v226_v22  ;;  %1573 = vmatmul.mubr.msk.f32.vlgmr.msra.gmra.mrb[2].mxu1 %vm526_vm11, %v226_v22 }
 0x3d6   :  { %v2378_v59 = vmax.f32 %v1236_v43, %v1224_v14  ;;  %v2381_v63 = vmax.f32 %v1237_v25, %v1225_v31  ;;  %1402 = vmatprep.mubr.f32.mxu0 %v2516_v33  ;;  %1473 = vmatprep.mubr.f32.mxu1 %v2516_v33 }
 0x3d8   :  { %1245 = vrot.lane.b32.xlu0 %v2378_v59, %s1673_s5  ;;  %1247 = vrot.lane.b32.xlu1 %v2381_v63, %s1673_s5 }
 0x3dc   :  { %1249 = vrot.lane.b32.xlu0 %v2387_v21, %s1673_s5  ;;  %1259 = vrot.lane.b32.xlu1 %v2365_v15, %s1674_s14 }
 0x3e0   :  { %1261 = vrot.lane.b32.xlu0 %v2378_v59, %s1674_s14  ;;  %1263 = vrot.lane.b32.xlu1 %v2381_v63, %s1674_s14 }
 0x3e4   :  { %1265 = vrot.lane.b32.xlu0 %v2387_v21, %s1674_s14  ;;  %1275 = vrot.lane.b32.xlu1 %v2365_v15, %s1675_s15 }
 0x3e8   :  { %1277 = vrot.lane.b32.xlu0 %v2378_v59, %s1675_s15  ;;  %1279 = vrot.lane.b32.xlu1 %v2381_v63, %s1675_s15 }
 0x3ec   :  { %1281 = vrot.lane.b32.xlu0 %v2387_v21, %s1675_s15  ;;  %1291 = vrot.lane.b32.xlu1 %v2365_v15, %s1676_s16 }
 0x3f0   :  { %1293 = vrot.lane.b32.xlu0 %v2378_v59, %s1676_s16  ;;  %1295 = vrot.lane.b32.xlu1 %v2381_v63, %s1676_s16 }
 0x3f4   :  { %1297 = vrot.lane.b32.xlu0 %v2387_v21, %s1676_s16  ;;  %1487 = vperm.xlu1 %1608, %v1484_v58  }
 0x446   :  { %v1244_v33 = vpop.permute.xlu1 %1243 }
 0x44a   :  { %v1248_v42 = vpop.permute.xlu1 %1247  ;;  %v1246_v41 = vpop.permute.xlu0 %1245 }
 0x44b   :  { %v1253_v24 = vsel %vm386_vm6, %v1244_v33, %v1246_v41  ;;  %v1252_v11 = vsel %vm386_vm6, %v1246_v41, %v1248_v42 }
 0x44c   :  { %v1256_v13 = vadd.f32 %v1253_v24, %v1958_v47  ;;  %v1257_v34 = vadd.f32 %v1252_v11, %v1961_v48 }
 0x44e   :  { %v1260_v52 = vpop.permute.xlu1 %1259  ;;  %v1250_v53 = vpop.permute.xlu0 %1249  ;;  %v1308_v12 = vmax.f32 %v2378_v59, %v1256_v13 }
 0x44f   :  { %v1254_v35 = vsel %vm386_vm6, %v1250_v53, %v1244_v33  ;;  %v1251_v2 = vsel %vm386_vm6, %v1248_v42, %v1250_v53  ;;  %v227_v42 = vld [vmem:[%s2501_s3 + $0xc] sm:$0xf]  ;;  %s1677_s3 = smov [#allocation2]  }
 0x450   :  { %v1255_v20 = vadd.f32 %v1254_v35, %v1964_v50  ;;  %v1258_v0 = vadd.f32 %v1251_v2, %v1967_v51  ;;  %s1538_s26 = sshll.u32 %s1677_s3, 4  ;;  %s1539_s26 = int_to_ptr.vmem [resolvable:$true] %s1538_s26 }
 0x451   :  { %s1643_s0 = scalar_lea.vmem %s1539_s26, 256  ;;  %p1648_p1 = scmp.lt.s32.totalorder %s1539_s26, %s1539_s26 }
 0x452   :  { %v1264_v18 = vpop.permute.xlu1 %1263  ;;  %v1262_v37 = vpop.permute.xlu0 %1261  ;;  %v1307_v44 = vmax.f32 %v2365_v15, %v1255_v20  ;;  %p1644_p0 = scmp.ne.s32.totalorder %s1539_s26, %s1643_s0  ;;  %p1649_p2 = scmp.lt.s32.totalorder %s1643_s0, %s1643_s0 }
 0x453   :  { %v1269_v38 = vsel %vm419_vm7, %v1260_v52, %v1262_v37  ;;  %v1268_v3 = vsel %vm419_vm7, %v1262_v37, %v1264_v18 }
 0x454   :  { %v1272_v10 = vadd.f32 %v1269_v38, %v2519_v32  ;;  %v1273_v5 = vadd.f32 %v1268_v3, %v1981_v61  ;;  %v1309_v61 = vmax.f32 %v2381_v63, %v1257_v34  ;;  %p1650_p3 = por %p1649_p2, %p1648_p1 }
 0x456   :  { %v1276_v54 = vpop.permute.xlu1 %1275  ;;  %v1266_v57 = vpop.permute.xlu0 %1265  ;;  %p1651_p4 = pnand %p1650_p3, %p1644_p0 }
 0x457   :  { %v1270_v27 = vsel %vm419_vm7, %v1266_v57, %v1260_v52 }
 0x458   :  { %v1271_v49 = vadd.f32 %v1270_v27, %v1984_v62 }
 0x45a   :  { %v1280_v30 = vpop.permute.xlu1 %1279  ;;  %v1278_v60 = vpop.permute.xlu0 %1277 }
 0x45b   :  { %v1284_v6 = vsel %vm452_vm8, %v1278_v60, %v1280_v30  ;;  %v1285_v8 = vsel %vm452_vm8, %v1276_v54, %v1278_v60 }
 0x45c   :  { %v1287_v56 = vadd.f32 %v1285_v8, %v2517_v19  ;;  %v1288_v9 = vadd.f32 %v1284_v6, %v2518_v29  ;;  %v1267_v19 = vsel %vm419_vm7, %v1264_v18, %v1266_v57 }
 0x45d   :  { %v1274_v14 = vadd.f32 %v1267_v19, %v1990_v7  ;;  %v1310_v7 = vmax.f32 %v2387_v21, %v1258_v0 }
 0x45e   :  { %v1292_v29 = vpop.permute.xlu1 %1291  ;;  %v1282_v47 = vpop.permute.xlu0 %1281  ;;  %v1311_v28 = vmax.f32 %v1271_v49, %v1287_v56  ;;  %v1312_v50 = vmax.f32 %v1272_v10, %v1288_v9 }
 0x45f   :  { %v1283_v32 = vsel %vm452_vm8, %v1280_v30, %v1282_v47  ;;  %v1286_v62 = vsel %vm452_vm8, %v1282_v47, %v1276_v54 }
 0x460   :  { %v1289_v23 = vadd.f32 %v1283_v32, %v1995_v16  ;;  %v1290_v36 = vadd.f32 %v1286_v62, %v2008_v40  ;;  %v1315_v31 = vmax.f32 %v1307_v44, %v1311_v28  ;;  %v1316_v1 = vmax.f32 %v1308_v12, %v1312_v50 }
 0x462   :  { %v1296_v43 = vpop.permute.xlu1 %1295  ;;  %v1294_v25 = vpop.permute.xlu0 %1293  ;;  %v1313_v59 = vmax.f32 %v1273_v5, %v1289_v23  ;;  %v1314_v15 = vmax.f32 %v1274_v14, %v1290_v36 }
 0x463   :  { %v1300_v16 = vsel %vm485_vm9, %v1294_v25, %v1296_v43  ;;  %v1301_v40 = vsel %vm485_vm9, %v1292_v29, %v1294_v25 }
 0x464   :  { %v1303_v48 = vadd.f32 %v1301_v40, %v2016_v4  ;;  %v1304_v51 = vadd.f32 %v1300_v16, %v2033_v39  ;;  %v1317_v4 = vmax.f32 %v1309_v61, %v1313_v59  ;;  %v1318_v41 = vmax.f32 %v1310_v7, %v1314_v15 }
 0x466   :  { %v1319_v17 = vmax.f32 %v1315_v31, %v1303_v48  ;;  %v1320_v26 = vmax.f32 %v1316_v1, %v1304_v51  ;;  %v1298_v22 = vpop.permute.xlu0 %1297 }
 0x467   :  { %v1299_v58 = vsel %vm485_vm9, %v1296_v43, %v1298_v22  ;;  %v1302_v33 = vsel %vm485_vm9, %v1298_v22, %v1292_v29 }
 0x468   :  { %v1305_v39 = vadd.f32 %v1299_v58, %v2039_v46  ;;  %v1306_v63 = vadd.f32 %v1302_v33, %v2045_v55  ;;  %1574 = vmatprep.subr.msk.mxu0 %vm530_vm10, %v1320_v26 }
 0x469   :  { %1575 = vmatpush1.msk.msra.mxu0 %vm530_vm10, %v1319_v17 }
 0x46a   :  { %v1321_v21 = vmax.f32 %v1317_v4, %v1305_v39  ;;  %v1322_v52 = vmax.f32 %v1318_v41, %v1306_v63  ;;  %1576 = vmatmul.mubr.msk.f32.vlgmr.msra.gmra.mrb[2].mxu0 %vm526_vm11, %v227_v42 }
 0x46c   :  { %1577 = vmatprep.subr.msk.mxu1 %vm530_vm10, %v1322_v52 }
 0x46d   :  { %1578 = vmatpush1.msk.msra.mxu1 %vm530_vm10, %v1321_v21 }
 0x46e   :  { %1579 = vmatmul.mubr.msk.f32.vlgmr.msra.gmra.mrb[2].mxu1 %vm526_vm11, %v227_v42 }
 0x473   :  { %v1488_v45 = vpop.permute.xlu1 %1487 }
 0x53d   :  { %v1404_v53 = vpop.f32.mrb[2].mxu0 }
 0x53e   :  { %v1490_v18 = vadd.f32 %v1488_v45, %v1404_v53  ;;  %v1406_v46 = vpop.f32.mrb[3].mxu0 }
 0x53f   :  { %v1491_v37 = vadd.f32 %v1488_v45, %v1406_v46 }
 0x540   :  { %v1580_v55 = vmul.f32 -1.442695, %v1490_v18 }
 0x541   :  { %v1581_v54 = vmul.f32 -1.442695, %v1491_v37  ;;  %v1475_v57 = vpop.f32.mrb[2].mxu1 }
 0x542   :  { %1627 = vpow2.f32 %v1580_v55  ;;  %v1492_v24 = vadd.f32 %v1488_v45, %v1475_v57  ;;  %v1477_v35 = vpop.f32.mrb[3].mxu1 }
 0x543   :  { %1629 = vpow2.f32 %v1581_v54  ;;  %v1493_v38 = vadd.f32 %v1488_v45, %v1477_v35 }
 0x544   :  { %v1582_v27 = vmul.f32 -1.442695, %v1492_v24 }
 0x545   :  { %v1583_v30 = vmul.f32 -1.442695, %v1493_v38 }
 0x546   :  { %1631 = vpow2.f32 %v1582_v27 }
 0x547   :  { %1633 = vpow2.f32 %v1583_v30 }
 0x54c   :  { %v1628_v60 = vpop.eup %1627 }
 0x54d   :  { %v1630_v6 = vpop.eup %1629  ;;  %v1506_v8 = vadd.f32 1.0, %v1628_v60 }
 0x54e   :  { %v1507_v56 = vadd.f32 1.0, %v1630_v6 }
 0x54f   :  { %1635 = vrcp.f32 %v1506_v8 }
 0x550   :  { %v1632_v9 = vpop.eup %1631  ;;  %1637 = vrcp.f32 %v1507_v56 }
 0x551   :  { %v1634_v13 = vpop.eup %1633  ;;  %v1508_v20 = vadd.f32 1.0, %v1632_v9 }
 0x552   :  { %v1509_v10 = vadd.f32 1.0, %v1634_v13 }
 0x553   :  { %1639 = vrcp.f32 %v1508_v20 }
 0x554   :  { %1641 = vrcp.f32 %v1509_v10 }
 0x559   :  { %v1636_v49 = vpop.eup %1635 }
 0x55a   :  { %v1638_v11 = vpop.eup %1637  ;;  %v1518_v2 = vmul.f32 %v1636_v49, %v1490_v18 }
 0x55b   :  { %v1519_v3 = vmul.f32 %v1638_v11, %v1491_v37 }
 0x55d   :  { %v1640_v19 = vpop.eup %1639  ;;  %v1526_v29 = vcombine.low %v1518_v2, %v1519_v3 }
 0x55e   :  { %v1642_v47 = vpop.eup %1641  ;;  %v1520_v28 = vmul.f32 %v1640_v19, %v1492_v24 }
 0x55f   :  { %v1521_v50 = vmul.f32 %v1642_v47, %v1493_v38  ;;  %1530 = vst [vmem:[#allocation2] sm:$0xff] %v1526_v29 }
 0x561   :  { %v1527_v32 = vcombine.low %v1520_v28, %v1521_v50 }
 0x563   :  { %1531 = vst [vmem:[#allocation2 + $0x8] sm:$0xff] %v1527_v32 }
 0x564   :  { %1654 = shalt.err (!%p1651_p4)
}
 0x565   :  { %s1655_s2 = scalar_lea.hbm %s2504_s6, 256 }
 0x566   :  { %p1656_p5 = scmp.ne.s32.totalorder %s2504_s6, %s1655_s2  ;;  %p1659_p6 = scmp.lt.u32.totalorder %s1655_s2, %s2504_s6 }
 0x568   :  { %p1661_p7 = pnand %p1659_p6, %p1656_p5 }
 0x56a   :  { %1664 = shalt.err (!%p1661_p7)
}
 0x56b   :  { %1541 = dma.vmem_to_hbm [thread:$0]  %s1539_s26, 256, %s2504_s6, [#allocation3]  }
 0x56c   :  { %1665 = dma.done.wait [#allocation3], 256  }
 0x56d   :  { %1666 = vsyncadd [#allocation3], 4294967040 }
 0x56e   :  { %1545 = vsyncpa [#allocation3], 1 }

</bundles_post_ra>
